<compile_context>
chip_gen: v6e
topology: v6e:2x2x1
jax: 0.10.0
libtpu: 0.0.40
codegen_flags: <defaults>
</compile_context>

<pallas_src>
import functools
import math

import numpy as np

import jax
import jax.numpy as jnp
from jax.experimental import pallas as pl
from jax.experimental.pallas import tpu as pltpu

_LANES = 128
_TARGET_BLOCK_BYTES = 4 * 1024 * 1024      # per input, per pipeline buffer
_VMEM_LIMIT_BYTES = 32 * 1024 * 1024       # raises v5e's 16 MiB scoped default
_MIN_SPLIT_BLOCK_BYTES = 512 * 1024        # split into >=2 tiles past this


def _round_up(x, m):
    return ((x + m - 1) // m) * m


def _best_group(r, c, max_g=128):
    """Largest divisor G of r (<= max_g) maximizing lane density of c*G."""
    best_g, best_key = 1, None
    for g in range(1, min(r, max_g) + 1):
        if r % g:
            continue
        w = c * g
        key = (w / _round_up(w, _LANES), g)   # density, then prefer wider rows
        if best_key is None or key > best_key:
            best_g, best_key = g, key
    return best_g


def _huber_partial_kernel(pred_ref, tgt_ref, out_ref, *,
                          delta, inv_two_delta, half_delta,
                          n_rows, row_tile, grp, needs_mask, num_tiles):
    def emit(masked):
        # elementwise Huber (spec's formula) in f32 regardless of input dtype
        err = pred_ref[...].astype(jnp.float32) - tgt_ref[...].astype(jnp.float32)
        abs_err = jnp.abs(err)
        loss = jnp.where(abs_err <= delta,
                         inv_two_delta * err * err,
                         abs_err - half_delta)
        if masked:
            # rows still valid in this (last, ragged) tile — scalar threshold,
            # vector side is just iota + cmp + select (keep it a select: NaN-safe)
            rem = n_rows - pl.program_id(0) * row_tile
            row = jax.lax.broadcasted_iota(jnp.int32, loss.shape, 0)
            loss = jnp.where(row < rem, loss, 0.0)
        w = loss.shape[-1]
        # Fold the row tile down to a (grp, w) partial: sum over the leading
        # (vreg-tile-aligned) axis == plain vreg+vreg adds on the VPU, no
        # cross-lane reduce and no carried scalar in the hot loop.
        # TODO(synk): verify via pl.lower_as_mlir that this reshape+sum stays a
        # vreg-add chain (no VMEM relayout); if not, switch to an unrolled
        # fori_loop accumulating grp-row slices.
        out_ref[...] = loss.reshape(row_tile // grp, grp, w).sum(axis=0)

    if not needs_mask:
        emit(False)
    elif num_tiles == 1:
        emit(True)
    else:
        is_last = pl.program_id(0) == pl.num_programs(0) - 1

        @pl.when(is_last)
        def _():
            emit(True)

        @pl.when(jnp.logical_not(is_last))
        def _():
            emit(False)


def camera_loss(pred_pose, gt_pose, *, delta=0.1, weights=(1.0, 1.0, 0.5)):
    assert pred_pose.shape == gt_pose.shape, "pred/gt pose shapes must match"
    c = pred_pose.shape[-1]
    assert c >= 8, "pose vector must have >= 8 entries (3 T + 4 quat + >=1 focal)"
    r = int(np.prod(pred_pose.shape[:-1]))
    assert r >= 1

    # per-column weights = module_weight / (count used in that slice's mean);
    # applied to the tiny partial-sum output in the wrapper (commute with sum).
    wcol = np.zeros((c,), np.float32)
    wcol[0:3] = weights[0] / (r * 3)
    wcol[3:7] = weights[1] / (r * 4)
    wcol[7:] = weights[2] / (r * (c - 7))

    # Lane-dense repack (free reshape, no HBM copy).
    g = _best_group(r, c)
    rs, wd = r // g, c * g
    pred2 = pred_pose.reshape(rs, wd)
    gt2 = gt_pose.reshape(rs, wd)
    wrow = jnp.asarray(np.tile(wcol, g)[None, :], dtype=jnp.float32)

    # dtype-aware row granularity: f32 -> 8, bf16 -> 16, int8/fp8 -> 32 sublanes
    itemsizes = (jnp.dtype(pred_pose.dtype).itemsize, jnp.dtype(gt_pose.dtype).itemsize)
    min_itemsize, max_itemsize = min(itemsizes), max(itemsizes)
    grp = max(8, 32 // min_itemsize)

    # Row tile sized from a VMEM byte budget (accounting for lane padding).
    w_padded = _round_up(wd, _LANES)
    rows_budget = max(grp, (_TARGET_BLOCK_BYTES // (w_padded * max_itemsize))
                      // grp * grp)
    rows_needed = _round_up(rs, grp)
    row_tile = min(rows_budget, rows_needed)
    # Ensure >=2 tiles when the slab is big enough that splitting is worth it
    # (lets the "parallel" grid axis shard across v7x's two TensorCores).
    if row_tile >= rows_needed and rows_needed * w_padded * max_itemsize >= _MIN_SPLIT_BLOCK_BYTES:
        row_tile = max(grp, _round_up((rows_needed + 1) // 2, grp))
    num_tiles = pl.cdiv(rs, row_tile)
    needs_mask = (rs % row_tile) != 0

    kernel = functools.partial(
        _huber_partial_kernel,
        delta=float(delta),
        inv_two_delta=0.5 / float(delta),
        half_delta=0.5 * float(delta),
        n_rows=rs,
        row_tile=row_tile,
        grp=grp,
        needs_mask=needs_mask,
        num_tiles=num_tiles,
    )

    psums = pl.pallas_call(
        kernel,
        out_shape=jax.ShapeDtypeStruct((num_tiles * grp, wd), jnp.float32),
        grid_spec=pltpu.PrefetchScalarGridSpec(
            num_scalar_prefetch=0,
            grid=(num_tiles,),
            in_specs=[
                pl.BlockSpec((row_tile, wd), lambda i: (i, 0)),
                pl.BlockSpec((row_tile, wd), lambda i: (i, 0)),
            ],
            out_specs=pl.BlockSpec((grp, wd), lambda i: (i, 0)),
        ),
        compiler_params=pltpu.CompilerParams(
            # independent per-tile partial sums -> parallel (dual-TC on v7x)
            dimension_semantics=("parallel",),
            vmem_limit_bytes=_VMEM_LIMIT_BYTES,
        ),
    )(pred2, gt2)

    # Tiny final weighted reduction (a few KiB at most); fuses with the sum.
    return jnp.sum(psums * wrow)


# ---------------------------------------------------------------------------
# pure-JAX reference (mirrors the PyTorch module exactly)
# ---------------------------------------------------------------------------
def _huber_mean_ref(pred, target, delta):
    err = pred.astype(jnp.float32) - target.astype(jnp.float32)
    abs_err = jnp.abs(err)
    loss = jnp.where(abs_err <= delta, 0.5 * err * err / delta, abs_err - 0.5 * delta)
    return loss.mean()


def camera_loss_ref(pred_pose, gt_pose, *, delta=0.1, weights=(1.0, 1.0, 0.5)):
    loss_t = _huber_mean_ref(pred_pose[..., :3], gt_pose[..., :3], delta)
    loss_r = _huber_mean_ref(pred_pose[..., 3:7], gt_pose[..., 3:7], delta)
    loss_fl = _huber_mean_ref(pred_pose[..., 7:], gt_pose[..., 7:], delta)
    return weights[0] * loss_t + weights[1] * loss_r + weights[2] * loss_fl


if __name__ == "__main__":
    key = jax.random.PRNGKey(0)
    k1, k2, k3, k4, k5, k6 = jax.random.split(key, 6)

    # Case 1: pose dim 9 (3 T + 4 quat + 2 focal), batch=2, views=8, f32.
    pred1 = jax.random.normal(k1, (2, 8, 9), dtype=jnp.float32) * 0.2
    gt1 = jax.random.normal(k2, (2, 8, 9), dtype=jnp.float32) * 0.2
    out1 = jax.block_until_ready(camera_loss(pred1, gt1))
    ref1 = camera_loss_ref(pred1, gt1)
    assert jnp.allclose(out1, ref1, rtol=1e-5, atol=1e-6), (out1, ref1)

    # Case 2: pose dim 8 (3 T + 4 quat + 1 focal), batch=2, views=64, f32.
    pred2 = jax.random.normal(k3, (2, 64, 8), dtype=jnp.float32) * 0.2
    gt2 = jax.random.normal(k4, (2, 64, 8), dtype=jnp.float32) * 0.2
    out2 = jax.block_until_ready(camera_loss(pred2, gt2))
    ref2 = camera_loss_ref(pred2, gt2)
    assert jnp.allclose(out2, ref2, rtol=1e-5, atol=1e-6), (out2, ref2)

    # Case 3: bf16 inputs (exercises dtype-aware 16-row granularity + masking).
    pred3 = (jax.random.normal(k5, (2, 128, 9), dtype=jnp.float32) * 0.2).astype(jnp.bfloat16)
    gt3 = (jax.random.normal(k6, (2, 128, 9), dtype=jnp.float32) * 0.2).astype(jnp.bfloat16)
    out3 = jax.block_until_ready(camera_loss(pred3, gt3))
    ref3 = camera_loss_ref(pred3, gt3)
    assert jnp.allclose(out3, ref3, rtol=1e-4, atol=1e-5), (out3, ref3)

    print("KERNEL_OK")
</pallas_src>

<mosaic_0001>
module attributes {stable_mosaic.version = 11 : i64} {
  func.func @_huber_partial_kernel(%arg0: i32, %arg1: memref<8x144xf32, #tpu.memory_space<vmem>>, %arg2: memref<8x144xf32, #tpu.memory_space<vmem>>, %arg3: memref<8x144xf32, #tpu.memory_space<vmem>>) attributes {dimension_semantics = [#tpu.dimension_semantics<parallel>], iteration_bounds = array<i64: 1>, scalar_prefetch = 0 : i64, scratch_operands = 0 : i64, tpu.core_type = #tpu.core_type<tc>, window_params = [{transform_indices = @transform_0, window_bounds = array<i64: 8, 144>}, {transform_indices = @transform_1, window_bounds = array<i64: 8, 144>}, {transform_indices = @transform_2, window_bounds = array<i64: 8, 144>}]} {
    %c0 = arith.constant 0 : index
    %c0_0 = arith.constant 0 : index
    %0 = vector.load %arg1[%c0, %c0_0] : memref<8x144xf32, #tpu.memory_space<vmem>>, vector<8x144xf32>
    %c0_1 = arith.constant 0 : index
    %c0_2 = arith.constant 0 : index
    %1 = vector.load %arg2[%c0_1, %c0_2] : memref<8x144xf32, #tpu.memory_space<vmem>>, vector<8x144xf32>
    %2 = arith.subf %0, %1 : vector<8x144xf32>
    %3 = math.absf %2 : vector<8x144xf32>
    %cst = arith.constant 1.000000e-01 : f32
    %4 = vector.broadcast %cst : f32 to vector<8x144xf32>
    %5 = arith.cmpf ole, %3, %4 : vector<8x144xf32>
    %cst_3 = arith.constant 5.000000e+00 : f32
    %6 = vector.broadcast %cst_3 : f32 to vector<8x144xf32>
    %7 = arith.mulf %6, %2 : vector<8x144xf32>
    %8 = arith.mulf %7, %2 : vector<8x144xf32>
    %cst_4 = arith.constant 5.000000e-02 : f32
    %9 = vector.broadcast %cst_4 : f32 to vector<8x144xf32>
    %10 = arith.subf %3, %9 : vector<8x144xf32>
    %11 = arith.select %5, %8, %10 : vector<8x144xi1>, vector<8x144xf32>
    %c8_i32 = arith.constant 8 : i32
    %12 = arith.muli %arg0, %c8_i32 : i32
    %c1_i32 = arith.constant 1 : i32
    %13 = arith.subi %c1_i32, %12 : i32
    %14 = tpu.iota {dimensions = array<i32: 0>} : vector<8x144xi32>
    %15 = vector.broadcast %13 : i32 to vector<8x144xi32>
    %16 = arith.cmpi slt, %14, %15 : vector<8x144xi32>
    %cst_5 = arith.constant 0.000000e+00 : f32
    %17 = vector.broadcast %cst_5 : f32 to vector<8x144xf32>
    %18 = arith.select %16, %11, %17 : vector<8x144xi1>, vector<8x144xf32>
    %19 = vector.shape_cast %18 : vector<8x144xf32> to vector<1x8x144xf32>
    %cst_6 = arith.constant dense<0.000000e+00> : vector<8x144xf32>
    %20 = vector.multi_reduction <add>, %19, %cst_6 [0] : vector<1x8x144xf32> to vector<8x144xf32>
    %c0_7 = arith.constant 0 : index
    %c0_8 = arith.constant 0 : index
    %21 = vector.load %arg3[%c0_7, %c0_8] : memref<8x144xf32, #tpu.memory_space<vmem>>, vector<8x144xf32>
    tpu.vector_store %arg3[%c0_7, %c0_8], %20 {strides = array<i32>} : memref<8x144xf32, #tpu.memory_space<vmem>>, vector<8x144xf32>,
    return
  }
  func.func @transform_0(%arg0: i32) -> (i32, i32) {
    %c0_i32 = arith.constant 0 : i32
    %c0_i32_0 = arith.constant 0 : i32
    return %arg0, %c0_i32 : i32, i32
  }
  func.func @transform_1(%arg0: i32) -> (i32, i32) {
    %c0_i32 = arith.constant 0 : i32
    %c0_i32_0 = arith.constant 0 : i32
    return %arg0, %c0_i32 : i32, i32
  }
  func.func @transform_2(%arg0: i32) -> (i32, i32) {
    %c0_i32 = arith.constant 0 : i32
    %c0_i32_0 = arith.constant 0 : i32
    return %arg0, %c0_i32 : i32, i32
  }
}

</mosaic_0001>

<bundles_post_ra>
// kernel: tpu_custom_call.1
= control target key start
LH: loop header
LB: loop body
LE: loop exit
PB: predicated region body
PF: predicated region fallthrough
CT: control target
= control target key end

     0   :  { %7 = vsyncpa [#allocation3], 0  ;;  %s379_s0 = inlined_call_operand.hbm [shape: f32[1,144], index: 0, kind: input, shape index: {}]   ;;  %s380_s1 = inlined_call_operand.hbm [shape: f32[1,144], index: 1, kind: input, shape index: {}]   ;;  %s381_s2 = inlined_call_operand.hbm [shape: f32[8,144], index: 2, kind: output, shape index: {}]  }
   0x1   :  { %8 = vsyncpa [#allocation6], 0 }
   0x2   :  { %9 = vsyncpa [#allocation4], 0 }
   0x3   :  { %14 = vsyncadd [#allocation3], 224  ;;  %s297_s9 = smov [#allocation2]  }
   0x4   :  { %s15_s10 = sshll.u32 %s297_s9, 4  ;;  %s16_s10 = int_to_ptr.vmem [resolvable:$true] %s15_s10 }
   0x5   :  { %s239_s11 = scalar_lea.vmem %s16_s10, 32  ;;  %s243_s12 = scalar_lea.vmem %s16_s10, 256 }
   0x6   :  { %p240_p0 = scmp.ne.s32.totalorder %s16_s10, %s239_s11  ;;  %p244_p1 = scmp.lt.s32.totalorder %s16_s10, %s16_s10 }
   0x7   :  { %p245_p2 = scmp.lt.s32.totalorder %s243_s12, %s239_s11 }
   0x9   :  { %p246_p3 = por %p245_p2, %p244_p1 }
   0xb   :  { %p247_p4 = pnand %p246_p3, %p240_p0 }
   0xd   :  { %250 = shalt.err (!%p247_p4)
}
   0xe   :  { %s298_s13 = smov 32   ;;  %s299_s14 = smov 2  }
   0xf   :  { %21 = dma.hbm_to_vmem [thread:$0]  %s379_s0, 32, %s16_s10, [#allocation3], %s298_s13, %s298_s13, %s299_s14  }
  0x10   :  { %26 = vsyncadd [#allocation6], 224  ;;  %s300_s17 = smov [#allocation5]  }
  0x11   :  { %s27_s18 = sshll.u32 %s300_s17, 4  ;;  %s28_s18 = int_to_ptr.vmem [resolvable:$true] %s27_s18 }
  0x12   :  { %s259_s19 = scalar_lea.vmem %s28_s18, 32  ;;  %s263_s20 = scalar_lea.vmem %s28_s18, 256 }
  0x13   :  { %p260_p5 = scmp.ne.s32.totalorder %s28_s18, %s259_s19  ;;  %p264_p6 = scmp.lt.s32.totalorder %s28_s18, %s28_s18 }
  0x14   :  { %p265_p7 = scmp.lt.s32.totalorder %s263_s20, %s259_s19 }
  0x16   :  { %p266_p8 = por %p265_p7, %p264_p6 }
  0x18   :  { %p267_p9 = pnand %p266_p8, %p260_p5 }
  0x1a   :  { %270 = shalt.err (!%p267_p9)
}
  0x1b   :  { %33 = dma.hbm_to_vmem [thread:$0]  %s380_s1, 32, %s28_s18, [#allocation6], %s298_s13, %s298_s13, %s299_s14  }
  0x1c   :  { %291 = dma.done.wait [#allocation3], 256  }
  0x1d   :  { %292 = vsyncadd [#allocation3], 4294967040 }
  0x1e   :  { %293 = dma.done.wait [#allocation6], 256  }
  0x1f   :  { %294 = vsyncadd [#allocation6], 4294967040  ;;  %v40_v0 = vld [vmem:[#allocation2] sm:$0x3]  ;;  %v41_v1 = vld [vmem:[#allocation2 + $0x2] sm:$0x3]  ;;  %v114_v13 = vlaneseq }
  0x20   :  { %v42_v2 = vld [vmem:[#allocation2 + $0x4] sm:$0x3]  ;;  %v43_v3 = vld [vmem:[#allocation2 + $0x6] sm:$0x3]  ;;  %v44_v4 = vld [vmem:[#allocation2 + $0x8] sm:$0x3] }
  0x21   :  { %v45_v5 = vld [vmem:[#allocation2 + $0xa] sm:$0x3]  ;;  %v46_v6 = vld [vmem:[#allocation2 + $0xc] sm:$0x3]  ;;  %v47_v7 = vld [vmem:[#allocation2 + $0xe] sm:$0x3] }
  0x22   :  { %v48_v8 = vld [vmem:[#allocation5] sm:$0x3]  ;;  %v49_v9 = vld [vmem:[#allocation5 + $0x2] sm:$0x3]  ;;  %v50_v10 = vld [vmem:[#allocation5 + $0x4] sm:$0x3] }
  0x23   :  { %v51_v11 = vld [vmem:[#allocation5 + $0x6] sm:$0x3]  ;;  %v56_v12 = vsub.f32 %v40_v0, %v48_v8  ;;  %v52_v14 = vld [vmem:[#allocation5 + $0x8] sm:$0x3]  ;;  %v53_v15 = vld [vmem:[#allocation5 + $0xa] sm:$0x3]  ;;  %v57_v17 = vsub.f32 %v41_v1, %v49_v9  ;;  %v58_v18 = vsub.f32 %v42_v2, %v50_v10 }
  0x24   :  { %v54_v16 = vld [vmem:[#allocation5 + $0xc] sm:$0x3]  ;;  %v59_v19 = vsub.f32 %v43_v3, %v51_v11  ;;  %v301_v20 = vmov 1966171168   ;;  %v55_v22 = vld [vmem:[#allocation5 + $0xe] sm:$0x3]  ;;  %v60_v23 = vsub.f32 %v44_v4, %v52_v14  ;;  %v61_v24 = vsub.f32 %v45_v5, %v53_v15 }
  0x25   :  { %v131_v21 = vunpack.c.l.s4 %v301_v20  ;;  %v62_v25 = vsub.f32 %v46_v6, %v54_v16  ;;  %v64_v26 = vand.u32 2147483647, %v56_v12  ;;  %v63_v27 = vsub.f32 %v47_v7, %v55_v22  ;;  %s302_s0 = smov [#allocation7]  }
  0x26   :  { %v65_v28 = vand.u32 2147483647, %v57_v17  ;;  %v66_v29 = vand.u32 2147483647, %v58_v18  ;;  %v67_v30 = vand.u32 2147483647, %v59_v19 }
  0x27   :  { %v68_v31 = vand.u32 2147483647, %v60_v23  ;;  %v69_v32 = vand.u32 2147483647, %v61_v24  ;;  %v70_v33 = vand.u32 2147483647, %v62_v25  ;;  %v132_v43 = vunpack.c.0.s8 %v131_v21 }
  0x28   :  { %v71_v34 = vand.u32 2147483647, %v63_v27  ;;  %vm324_vm0 = vcmp.le.f32.partialorder %v64_v26, 0.1  ;;  %v328_v36 = vshrl.u32 %v114_v13, 7  ;;  %v80_v44 = vmul.f32 5.0, %v56_v12 }
  0x29   :  { %vm330_vm1 = vcmp.le.f32.partialorder %v65_v28, 0.1  ;;  %vm334_vm2 = vcmp.le.f32.partialorder %v66_v29, 0.1  ;;  %vm338_vm3 = vcmp.le.f32.partialorder %v67_v30, 0.1 }
  0x2a   :  { %vm342_vm4 = vcmp.le.f32.partialorder %v68_v31, 0.1  ;;  %vm346_vm5 = vcmp.le.f32.partialorder %v69_v32, 0.1  ;;  %vm350_vm6 = vcmp.le.f32.partialorder %v70_v33, 0.1  ;;  %v88_v53 = vmul.f32 %v80_v44, %v56_v12 }
  0x2b   :  { %v81_v45 = vmul.f32 5.0, %v57_v17  ;;  %v82_v46 = vmul.f32 5.0, %v58_v18  ;;  %v83_v47 = vmul.f32 5.0, %v59_v19  ;;  %v84_v48 = vmul.f32 5.0, %v60_v23  ;;  %s207_s1 = sshll.u32 %s302_s0, 4  ;;  %s208_s1 = int_to_ptr.vmem [resolvable:$true] %s207_s1 }
  0x2c   :  { %v85_v49 = vmul.f32 5.0, %v61_v24  ;;  %v86_v50 = vmul.f32 5.0, %v62_v25  ;;  %v87_v51 = vmul.f32 5.0, %v63_v27  ;;  %vm354_vm7 = vcmp.le.f32.partialorder %v71_v34, 0.1  ;;  %s271_s23 = scalar_lea.vmem %s208_s1, 256  ;;  %p276_p11 = scmp.lt.s32.totalorder %s208_s1, %s208_s1 }
  0x2d   :  { %v89_v54 = vmul.f32 %v81_v45, %v57_v17  ;;  %v90_v55 = vmul.f32 %v82_v46, %v58_v18  ;;  %v91_v56 = vmul.f32 %v83_v47, %v59_v19  ;;  %v92_v57 = vmul.f32 %v84_v48, %v60_v23  ;;  %p272_p10 = scmp.ne.s32.totalorder %s208_s1, %s271_s23  ;;  %p277_p12 = scmp.lt.s32.totalorder %s271_s23, %s271_s23 }
  0x2e   :  { %v93_v58 = vmul.f32 %v85_v49, %v61_v24  ;;  %v94_v59 = vmul.f32 %v86_v50, %v62_v25  ;;  %v95_v60 = vmul.f32 %v87_v51, %v63_v27  ;;  %v217_v61 = vadd.f32 -0.05, %v64_v26 }
  0x2f   :  { %v218_v62 = vadd.f32 -0.05, %v65_v28  ;;  %v219_v63 = vadd.f32 -0.05, %v66_v29  ;;  %v220_v0 = vadd.f32 -0.05, %v67_v30  ;;  %v135_v3 = vsub.s32 %v132_v43, %v328_v36  ;;  %p278_p13 = por %p277_p12, %p276_p11 }
  0x30   :  { %v221_v1 = vadd.f32 -0.05, %v68_v31  ;;  %v222_v2 = vadd.f32 -0.05, %v69_v32  ;;  %v223_v4 = vadd.f32 -0.05, %v70_v33  ;;  %v104_v6 = vsel %vm324_vm0, %v88_v53, %v217_v61 }
  0x31   :  { %v224_v5 = vadd.f32 -0.05, %v71_v34  ;;  %v105_v7 = vsel %vm330_vm1, %v89_v54, %v218_v62  ;;  %v106_v8 = vsel %vm334_vm2, %v90_v55, %v219_v63  ;;  %v107_v9 = vsel %vm338_vm3, %v91_v56, %v220_v0  ;;  %p279_p0 = pnand %p278_p13, %p272_p10 }
  0x32   :  { %v108_v10 = vsel %vm342_vm4, %v92_v57, %v221_v1  ;;  %v109_v11 = vsel %vm346_vm5, %v93_v58, %v222_v2  ;;  %v110_v12 = vsel %vm350_vm6, %v94_v59, %v223_v4  ;;  %v126_v14 = vcombine.low %v104_v6, %v105_v7 }
  0x33   :  { %v111_v13 = vsel %vm354_vm7, %v95_v60, %v224_v5  ;;  %v127_v15 = vcombine.low %v106_v8, %v107_v9  ;;  %v128_v16 = vcombine.low %v108_v10, %v109_v11  ;;  %vm117_vm8 = vcmp.lt.s32.totalorder %v328_v36, 1 }
  0x34   :  { %v129_v17 = vcombine.low %v110_v12, %v111_v13  ;;  %v136_v18 = vrot.slane %v126_v14, %v135_v3  ;;  %vm199_vm9 = vcmask 130048  }
  0x35   :  { %v143_v19 = vrot.slane %v127_v15, %v135_v3  ;;  %v150_v20 = vrot.slane %v128_v16, %v135_v3 }
  0x36   :  { %v157_v21 = vrot.slane %v129_v17, %v135_v3 }
  0x37   :  { %v158_v22 = vcombine.low %v136_v18, %v143_v19  ;;  %v159_v23 = vcombine.high %v136_v18, %v143_v19 }
  0x38   :  { %v160_v24 = vcombine.low %v150_v20, %v157_v21  ;;  %v161_v25 = vcombine.high %v150_v20, %v157_v21 }
  0x39   :  { %v168_v26 = vrot.slane %v158_v22, %v135_v3  ;;  %v175_v27 = vrot.slane %v159_v23, %v135_v3 }
  0x3a   :  { %v182_v28 = vrot.slane %v160_v24, %v135_v3  ;;  %v189_v29 = vrot.slane %v161_v25, %v135_v3 }
  0x3c   :  { %v190_v30 = vcombine.low %v168_v26, %v182_v28  ;;  %v191_v31 = vcombine.low %v175_v27, %v189_v29 }
  0x3e   :  { %v194_v32 = vsel %vm117_vm8, %v190_v30, 0.0  ;;  %v195_v33 = vsel %vm117_vm8, %v191_v31, 0.0 }
  0x3f   :  { %198 = vst [vmem:[#allocation7] sm:$0xff] %v194_v32  ;;  %200 = vst.msk [vmem:[#allocation7 + $0x8] sm:$0xff] %vm199_vm9, %v195_v33 }
  0x40   :  { %282 = shalt.err (!%p279_p0)
}
  0x41   :  { %210 = dma.vmem_to_hbm [thread:$0]  %s208_s1, 256, %s381_s2, [#allocation4]  }
  0x42   :  { %295 = dma.done.wait [#allocation4], 256  }
  0x43   :  { %296 = vsyncadd [#allocation4], 4294967040 }
  0x44   :  { %214 = vsyncpa [#allocation3], 1 }
  0x45   :  { %215 = vsyncpa [#allocation6], 1 }
  0x46   :  { %216 = vsyncpa [#allocation4], 1 }

</bundles_post_ra>
